<compile_context>
chip_gen: v7x
topology: tpu7x:2x2x1
jax: 0.10.0
libtpu: 0.0.40
codegen_flags: <defaults>
</compile_context>

<pallas_src>
import functools

import jax
import jax.numpy as jnp
import numpy as np
from jax import lax
from jax.experimental import pallas as pl
from jax.experimental.pallas import tpu as pltpu

_DIL = 2       # all three convs use dilation=2
_MAXPAD = 6    # largest halo: conv3 (kernel_size=7, padding=6)
_LANE = 128


def _round_up(n, m):
    return -(-n // m) * m


# ----------------------------------------------------------------------------
# Kernel A: conv chain + layout-agnostic elementwise tail, in conv layout (F, B)
# ----------------------------------------------------------------------------
def _conv_head_kernel(x_ref, w1_ref, b1_ref, w2_ref, b2_ref, w3_ref, b3_ref,
                      alpha_ref, h1_ref, d_ref, pbuf):
    F, B = x_ref.shape
    off = _MAXPAD

    # Zero the halo buffer ONCE; every layer fully overwrites the interior
    # [off, off+B), so the halo columns (and the 128-lane padding) stay zero.
    pbuf[...] = jnp.zeros(pbuf.shape, pbuf.dtype)

    def conv(v, w_ref, b_ref):
        # v: (F, B) f32.  w_ref: (K, Cout, Cin) tap-major.  b_ref: (F, 1) f32.
        K = w_ref.shape[0]
        pad = _DIL * (K - 1) // 2           # == the module's padding argument
        pbuf[:, off:off + B] = v.astype(pbuf.dtype)
        acc = jnp.zeros((F, B), jnp.float32)
        for k in range(K):                  # K accumulating MXU matmuls
            s = off - pad + k * _DIL        # static slice start, always >= 0
            acc = acc + jnp.dot(w_ref[k], pbuf[:, s:s + B],
                                preferred_element_type=jnp.float32)
        return acc + b_ref[...]

    x = x_ref[...].astype(jnp.float32)
    y = conv(x, w1_ref, b1_ref)
    y = conv(y, w2_ref, b2_ref)
    y = conv(y, w3_ref, b3_ref)             # h, in conv layout (F, B)

    a_act = alpha_ref[1]                    # self.activation PReLU slope
    h1_ref[...] = jnp.where(y > 0, y, a_act * y).astype(h1_ref.dtype)

    # Subtraction and Threshold are elementwise, hence layout-agnostic: the
    # (B, F) view of this d equals torch's (x.view(B,-1) - h) after Threshold.
    d = x - y
    d_ref[...] = jnp.where(d > 1e-4, d, jnp.float32(0.0)).astype(d_ref.dtype)


# ----------------------------------------------------------------------------
# Kernel B: fc Linear + both PReLUs, in flat layout (B, F)
# ----------------------------------------------------------------------------
def _fc_kernel(d_ref, fcw_ref, fcb_ref, alpha_ref, z1_ref):
    d = d_ref[...].astype(fcw_ref.dtype)
    z = jnp.dot(d, fcw_ref[...], preferred_element_type=jnp.float32) + fcb_ref[...]
    a_fc, a_act = alpha_ref[0], alpha_ref[1]
    z = jnp.where(z > 0, z, a_fc * z)        # fc's PReLU
    z1_ref[...] = jnp.where(z > 0, z, a_act * z).astype(z1_ref.dtype)  # activation


# ----------------------------------------------------------------------------
# pallas_call builders
# ----------------------------------------------------------------------------
def _make_conv_head(F, B, wdtype):
    pbuf_w = max(_round_up(B + 2 * _MAXPAD, _LANE), _LANE)   # lane-dense scratch
    vmem = pl.BlockSpec(memory_space=pltpu.MemorySpace.VMEM)
    smem = pl.BlockSpec(memory_space=pltpu.MemorySpace.SMEM)
    return pl.pallas_call(
        _conv_head_kernel,
        out_shape=(jax.ShapeDtypeStruct((F, B), jnp.float32),   # h1 (conv layout)
                   jax.ShapeDtypeStruct((F, B), jnp.float32)),  # d  (conv layout)
        in_specs=[vmem] * 7 + [smem],
        out_specs=(vmem, vmem),
        scratch_shapes=[pltpu.VMEM((F, pbuf_w), wdtype)],
        compiler_params=pltpu.CompilerParams(vmem_limit_bytes=32 * 1024 * 1024),
    )


def _make_fc(F, B):
    vmem = pl.BlockSpec(memory_space=pltpu.MemorySpace.VMEM)
    smem = pl.BlockSpec(memory_space=pltpu.MemorySpace.SMEM)
    return pl.pallas_call(
        _fc_kernel,
        out_shape=jax.ShapeDtypeStruct((B, 2 * F), jnp.float32),
        in_specs=[vmem, vmem, vmem, smem],
        out_specs=vmem,
        compiler_params=pltpu.CompilerParams(vmem_limit_bytes=32 * 1024 * 1024),
    )


# ----------------------------------------------------------------------------
# Parameters: PyTorch-style init + one-time kernel-layout prep (hoisted)
# ----------------------------------------------------------------------------
def init_params(num_features, key):
    F = num_features
    ks = jax.random.split(key, 8)

    def u(k, shape, fan_in):
        bound = 1.0 / np.sqrt(fan_in)
        return jax.random.uniform(k, shape, jnp.float32, -bound, bound)

    return dict(
        w1=u(ks[0], (F, F, 3), F * 3), b1=u(ks[1], (F,), F * 3),
        w2=u(ks[2], (F, F, 5), F * 5), b2=u(ks[3], (F,), F * 5),
        w3=u(ks[4], (F, F, 7), F * 7), b3=u(ks[5], (F,), F * 7),
        fcw=u(ks[6], (2 * F, F), F), fcb=u(ks[7], (2 * F,), F),
        alpha_fc=jnp.float32(0.25),   # nn.PReLU() default (fc's PReLU)
        alpha_act=jnp.float32(0.25),  # nn.PReLU() default (self.activation)
    )


def prep_params(params, use_bf16=False):
    """One-time layout prep (done ONCE, not per forward call).

    use_bf16=True casts matmul operand weights to bfloat16 (recommended for
    production F: ~3x MXU throughput, half the resident-weight VMEM, critical
    on v7x's 64 MiB VMEM).  Accumulation stays f32 via preferred_element_type.
    """
    wd = jnp.bfloat16 if use_bf16 else jnp.float32
    F = params["b1"].shape[0]

    def taps(w):   # (Cout, Cin, K) -> (K, Cout, Cin): one (F, F) matrix per tap
        return jnp.transpose(w, (2, 0, 1)).astype(wd)

    return dict(
        w1=taps(params["w1"]), b1=params["b1"].reshape(F, 1),
        w2=taps(params["w2"]), b2=params["b2"].reshape(F, 1),
        w3=taps(params["w3"]), b3=params["b3"].reshape(F, 1),
        fcw_t=params["fcw"].T.astype(wd),        # (F, 2F) so that z = d @ W^T
        fcb=params["fcb"].reshape(1, -1),        # (1, 2F), stays f32
        alphas=jnp.stack([params["alpha_fc"], params["alpha_act"]]),
    )


@jax.jit
def concat_v2_forward(x, prepped):
    """x: (batch, num_features) f32.  Returns (h1, z1) like the torch module."""
    B, F = x.shape
    wdtype = prepped["w1"].dtype
    # torch's x.view / .reshape calls are pure row-major reinterpretations ->
    # free XLA reshapes of the same buffer (bit-exact, valid for any F, B).
    x_fb = x.reshape(F, B)
    h1_fb, d_fb = _make_conv_head(F, B, wdtype)(
        x_fb, prepped["w1"], prepped["b1"], prepped["w2"], prepped["b2"],
        prepped["w3"], prepped["b3"], prepped["alphas"])
    h1 = h1_fb.reshape(B, F)       # free: torch x.view(num_batch, -1)
    d_bf = d_fb.reshape(B, F)      # free: same flat buffer, flat (B, F) view
    z1 = _make_fc(F, B)(d_bf, prepped["fcw_t"], prepped["fcb"], prepped["alphas"])
    return h1, z1


# ----------------------------------------------------------------------------
# Pure-JAX reference (same math as the PyTorch module), exact f32 matmuls
# ----------------------------------------------------------------------------
def reference_forward(x, params):
    B, F = x.shape
    HI = lax.Precision.HIGHEST

    def conv_ref(xc, w, b, pad, dil=_DIL):
        K = w.shape[2]
        xp = jnp.pad(xc, ((0, 0), (pad, pad)))
        out = jnp.zeros_like(xc)
        for k in range(K):
            out = out + jnp.dot(w[:, :, k], xp[:, k * dil:k * dil + xc.shape[1]],
                                precision=HI)
        return out + b[:, None]

    prelu = lambda v, a: jnp.where(v > 0, v, a * v)

    y = conv_ref(x.reshape(F, B), params["w1"], params["b1"], 2)
    y = conv_ref(y, params["w2"], params["b2"], 4)
    y = conv_ref(y, params["w3"], params["b3"], 6)
    h_flat = y.reshape(B, F)

    h1 = prelu(h_flat, params["alpha_act"])
    d = x - h_flat
    d = jnp.where(d > 1e-4, d, 0.0)
    z = jnp.dot(d, params["fcw"].T, precision=HI) + params["fcb"]
    z1 = prelu(prelu(z, params["alpha_fc"]), params["alpha_act"])
    return h1, z1


if __name__ == "__main__":
    emb_dim = 32   # stored by the torch module but unused in forward
    # Second config has num_features % batch != 0: the old permutation-matmul
    # restriction is gone because the .view()s are now real row-major reshapes.
    for num_features, batch in [(16, 8), (20, 8)]:
        key = jax.random.PRNGKey(0)
        k_param, k_x = jax.random.split(key)
        params = init_params(num_features, k_param)
        prepped = prep_params(params, use_bf16=False)  # use_bf16=True for prod F

        # forward requires x to hold batch * num_features elements
        x = jax.random.normal(k_x, (batch, num_features), dtype=jnp.float32)

        h1, z1 = jax.block_until_ready(concat_v2_forward(x, prepped))
        h1_ref, z1_ref = reference_forward(x, params)

        np.testing.assert_allclose(np.asarray(h1), np.asarray(h1_ref),
                                   rtol=1e-4, atol=1e-4)
        np.testing.assert_allclose(np.asarray(z1), np.asarray(z1_ref),
                                   rtol=1e-4, atol=1e-4)
        assert h1.shape == (batch, num_features)
        assert z1.shape == (batch, 2 * num_features)

    print("KERNEL_OK")
</pallas_src>

<mosaic_0001>
module attributes {stable_mosaic.version = 11 : i64} {
  func.func @_conv_head_kernel(%arg0: memref<16x8xf32, #tpu.memory_space<vmem>>, %arg1: memref<3x16x16xf32, #tpu.memory_space<vmem>>, %arg2: memref<16x1xf32, #tpu.memory_space<vmem>>, %arg3: memref<5x16x16xf32, #tpu.memory_space<vmem>>, %arg4: memref<16x1xf32, #tpu.memory_space<vmem>>, %arg5: memref<7x16x16xf32, #tpu.memory_space<vmem>>, %arg6: memref<16x1xf32, #tpu.memory_space<vmem>>, %arg7: memref<2xf32, #tpu.memory_space<smem>>, %arg8: memref<16x8xf32, #tpu.memory_space<vmem>>, %arg9: memref<16x8xf32, #tpu.memory_space<vmem>>, %arg10: memref<16x128xf32, #tpu.memory_space<vmem>>) attributes {dimension_semantics = [], scalar_prefetch = 0 : i64, scratch_operands = 1 : i64, tpu.core_type = #tpu.core_type<tc>} {
    %cst = arith.constant 0.000000e+00 : f32
    %0 = vector.broadcast %cst : f32 to vector<16x128xf32>
    %c0 = arith.constant 0 : index
    %c0_0 = arith.constant 0 : index
    %1 = vector.load %arg10[%c0, %c0_0] : memref<16x128xf32, #tpu.memory_space<vmem>>, vector<16x128xf32>
    tpu.vector_store %arg10[%c0, %c0_0], %0 {strides = array<i32>} : memref<16x128xf32, #tpu.memory_space<vmem>>, vector<16x128xf32>,
    %c0_1 = arith.constant 0 : index
    %c0_2 = arith.constant 0 : index
    %2 = vector.load %arg0[%c0_1, %c0_2] : memref<16x8xf32, #tpu.memory_space<vmem>>, vector<16x8xf32>
    %c0_3 = arith.constant 0 : index
    %c6 = arith.constant 6 : index
    %3 = vector.load %arg10[%c0_3, %c6] : memref<16x128xf32, #tpu.memory_space<vmem>>, vector<16x8xf32>
    tpu.vector_store %arg10[%c0_3, %c6], %2 {strides = array<i32>} : memref<16x128xf32, #tpu.memory_space<vmem>>, vector<16x8xf32>,
    %cst_4 = arith.constant 0.000000e+00 : f32
    %4 = vector.broadcast %cst_4 : f32 to vector<16x8xf32>
    %c0_5 = arith.constant 0 : index
    %c0_6 = arith.constant 0 : index
    %c0_7 = arith.constant 0 : index
    %5 = vector.load %arg1[%c0_5, %c0_6, %c0_7] : memref<3x16x16xf32, #tpu.memory_space<vmem>>, vector<1x16x16xf32>
    %6 = vector.shape_cast %5 : vector<1x16x16xf32> to vector<16x16xf32>
    %c0_8 = arith.constant 0 : index
    %c4 = arith.constant 4 : index
    %7 = vector.load %arg10[%c0_8, %c4] : memref<16x128xf32, #tpu.memory_space<vmem>>, vector<16x8xf32>
    %cst_9 = arith.constant dense<0.000000e+00> : vector<16x8xf32>
    %8 = tpu.matmul %6, %7, %cst_9 {dimension_numbers = #tpu.dot_dimension_numbers<[1], [0], [0], [1], [0, 0, 1, 1], [], []>} : vector<16x16xf32>, vector<16x8xf32>, vector<16x8xf32> -> vector<16x8xf32>
    %9 = arith.addf %4, %8 : vector<16x8xf32>
    %c1 = arith.constant 1 : index
    %c0_10 = arith.constant 0 : index
    %c0_11 = arith.constant 0 : index
    %10 = vector.load %arg1[%c1, %c0_10, %c0_11] : memref<3x16x16xf32, #tpu.memory_space<vmem>>, vector<1x16x16xf32>
    %11 = vector.shape_cast %10 : vector<1x16x16xf32> to vector<16x16xf32>
    %c0_12 = arith.constant 0 : index
    %c6_13 = arith.constant 6 : index
    %12 = vector.load %arg10[%c0_12, %c6_13] : memref<16x128xf32, #tpu.memory_space<vmem>>, vector<16x8xf32>
    %cst_14 = arith.constant dense<0.000000e+00> : vector<16x8xf32>
    %13 = tpu.matmul %11, %12, %cst_14 {dimension_numbers = #tpu.dot_dimension_numbers<[1], [0], [0], [1], [0, 0, 1, 1], [], []>} : vector<16x16xf32>, vector<16x8xf32>, vector<16x8xf32> -> vector<16x8xf32>
    %14 = arith.addf %9, %13 : vector<16x8xf32>
    %c2 = arith.constant 2 : index
    %c0_15 = arith.constant 0 : index
    %c0_16 = arith.constant 0 : index
    %15 = vector.load %arg1[%c2, %c0_15, %c0_16] : memref<3x16x16xf32, #tpu.memory_space<vmem>>, vector<1x16x16xf32>
    %16 = vector.shape_cast %15 : vector<1x16x16xf32> to vector<16x16xf32>
    %c0_17 = arith.constant 0 : index
    %c8 = arith.constant 8 : index
    %17 = vector.load %arg10[%c0_17, %c8] : memref<16x128xf32, #tpu.memory_space<vmem>>, vector<16x8xf32>
    %cst_18 = arith.constant dense<0.000000e+00> : vector<16x8xf32>
    %18 = tpu.matmul %16, %17, %cst_18 {dimension_numbers = #tpu.dot_dimension_numbers<[1], [0], [0], [1], [0, 0, 1, 1], [], []>} : vector<16x16xf32>, vector<16x8xf32>, vector<16x8xf32> -> vector<16x8xf32>
    %19 = arith.addf %14, %18 : vector<16x8xf32>
    %c0_19 = arith.constant 0 : index
    %c0_20 = arith.constant 0 : index
    %20 = vector.load %arg2[%c0_19, %c0_20] : memref<16x1xf32, #tpu.memory_space<vmem>>, vector<16x1xf32>
    %21 = vector.broadcast %20 : vector<16x1xf32> to vector<16x8xf32>
    %22 = arith.addf %19, %21 : vector<16x8xf32>
    %c0_21 = arith.constant 0 : index
    %c6_22 = arith.constant 6 : index
    %23 = vector.load %arg10[%c0_21, %c6_22] : memref<16x128xf32, #tpu.memory_space<vmem>>, vector<16x8xf32>
    tpu.vector_store %arg10[%c0_21, %c6_22], %22 {strides = array<i32>} : memref<16x128xf32, #tpu.memory_space<vmem>>, vector<16x8xf32>,
    %cst_23 = arith.constant 0.000000e+00 : f32
    %24 = vector.broadcast %cst_23 : f32 to vector<16x8xf32>
    %c0_24 = arith.constant 0 : index
    %c0_25 = arith.constant 0 : index
    %c0_26 = arith.constant 0 : index
    %25 = vector.load %arg3[%c0_24, %c0_25, %c0_26] : memref<5x16x16xf32, #tpu.memory_space<vmem>>, vector<1x16x16xf32>
    %26 = vector.shape_cast %25 : vector<1x16x16xf32> to vector<16x16xf32>
    %c0_27 = arith.constant 0 : index
    %c2_28 = arith.constant 2 : index
    %27 = vector.load %arg10[%c0_27, %c2_28] : memref<16x128xf32, #tpu.memory_space<vmem>>, vector<16x8xf32>
    %cst_29 = arith.constant dense<0.000000e+00> : vector<16x8xf32>
    %28 = tpu.matmul %26, %27, %cst_29 {dimension_numbers = #tpu.dot_dimension_numbers<[1], [0], [0], [1], [0, 0, 1, 1], [], []>} : vector<16x16xf32>, vector<16x8xf32>, vector<16x8xf32> -> vector<16x8xf32>
    %29 = arith.addf %24, %28 : vector<16x8xf32>
    %c1_30 = arith.constant 1 : index
    %c0_31 = arith.constant 0 : index
    %c0_32 = arith.constant 0 : index
    %30 = vector.load %arg3[%c1_30, %c0_31, %c0_32] : memref<5x16x16xf32, #tpu.memory_space<vmem>>, vector<1x16x16xf32>
    %31 = vector.shape_cast %30 : vector<1x16x16xf32> to vector<16x16xf32>
    %c0_33 = arith.constant 0 : index
    %c4_34 = arith.constant 4 : index
    %32 = vector.load %arg10[%c0_33, %c4_34] : memref<16x128xf32, #tpu.memory_space<vmem>>, vector<16x8xf32>
    %cst_35 = arith.constant dense<0.000000e+00> : vector<16x8xf32>
    %33 = tpu.matmul %31, %32, %cst_35 {dimension_numbers = #tpu.dot_dimension_numbers<[1], [0], [0], [1], [0, 0, 1, 1], [], []>} : vector<16x16xf32>, vector<16x8xf32>, vector<16x8xf32> -> vector<16x8xf32>
    %34 = arith.addf %29, %33 : vector<16x8xf32>
    %c2_36 = arith.constant 2 : index
    %c0_37 = arith.constant 0 : index
    %c0_38 = arith.constant 0 : index
    %35 = vector.load %arg3[%c2_36, %c0_37, %c0_38] : memref<5x16x16xf32, #tpu.memory_space<vmem>>, vector<1x16x16xf32>
    %36 = vector.shape_cast %35 : vector<1x16x16xf32> to vector<16x16xf32>
    %c0_39 = arith.constant 0 : index
    %c6_40 = arith.constant 6 : index
    %37 = vector.load %arg10[%c0_39, %c6_40] : memref<16x128xf32, #tpu.memory_space<vmem>>, vector<16x8xf32>
    %cst_41 = arith.constant dense<0.000000e+00> : vector<16x8xf32>
    %38 = tpu.matmul %36, %37, %cst_41 {dimension_numbers = #tpu.dot_dimension_numbers<[1], [0], [0], [1], [0, 0, 1, 1], [], []>} : vector<16x16xf32>, vector<16x8xf32>, vector<16x8xf32> -> vector<16x8xf32>
    %39 = arith.addf %34, %38 : vector<16x8xf32>
    %c3 = arith.constant 3 : index
    %c0_42 = arith.constant 0 : index
    %c0_43 = arith.constant 0 : index
    %40 = vector.load %arg3[%c3, %c0_42, %c0_43] : memref<5x16x16xf32, #tpu.memory_space<vmem>>, vector<1x16x16xf32>
    %41 = vector.shape_cast %40 : vector<1x16x16xf32> to vector<16x16xf32>
    %c0_44 = arith.constant 0 : index
    %c8_45 = arith.constant 8 : index
    %42 = vector.load %arg10[%c0_44, %c8_45] : memref<16x128xf32, #tpu.memory_space<vmem>>, vector<16x8xf32>
    %cst_46 = arith.constant dense<0.000000e+00> : vector<16x8xf32>
    %43 = tpu.matmul %41, %42, %cst_46 {dimension_numbers = #tpu.dot_dimension_numbers<[1], [0], [0], [1], [0, 0, 1, 1], [], []>} : vector<16x16xf32>, vector<16x8xf32>, vector<16x8xf32> -> vector<16x8xf32>
    %44 = arith.addf %39, %43 : vector<16x8xf32>
    %c4_47 = arith.constant 4 : index
    %c0_48 = arith.constant 0 : index
    %c0_49 = arith.constant 0 : index
    %45 = vector.load %arg3[%c4_47, %c0_48, %c0_49] : memref<5x16x16xf32, #tpu.memory_space<vmem>>, vector<1x16x16xf32>
    %46 = vector.shape_cast %45 : vector<1x16x16xf32> to vector<16x16xf32>
    %c0_50 = arith.constant 0 : index
    %c10 = arith.constant 10 : index
    %47 = vector.load %arg10[%c0_50, %c10] : memref<16x128xf32, #tpu.memory_space<vmem>>, vector<16x8xf32>
    %cst_51 = arith.constant dense<0.000000e+00> : vector<16x8xf32>
    %48 = tpu.matmul %46, %47, %cst_51 {dimension_numbers = #tpu.dot_dimension_numbers<[1], [0], [0], [1], [0, 0, 1, 1], [], []>} : vector<16x16xf32>, vector<16x8xf32>, vector<16x8xf32> -> vector<16x8xf32>
    %49 = arith.addf %44, %48 : vector<16x8xf32>
    %c0_52 = arith.constant 0 : index
    %c0_53 = arith.constant 0 : index
    %50 = vector.load %arg4[%c0_52, %c0_53] : memref<16x1xf32, #tpu.memory_space<vmem>>, vector<16x1xf32>
    %51 = vector.broadcast %50 : vector<16x1xf32> to vector<16x8xf32>
    %52 = arith.addf %49, %51 : vector<16x8xf32>
    %c0_54 = arith.constant 0 : index
    %c6_55 = arith.constant 6 : index
    %53 = vector.load %arg10[%c0_54, %c6_55] : memref<16x128xf32, #tpu.memory_space<vmem>>, vector<16x8xf32>
    tpu.vector_store %arg10[%c0_54, %c6_55], %52 {strides = array<i32>} : memref<16x128xf32, #tpu.memory_space<vmem>>, vector<16x8xf32>,
    %cst_56 = arith.constant 0.000000e+00 : f32
    %54 = vector.broadcast %cst_56 : f32 to vector<16x8xf32>
    %c0_57 = arith.constant 0 : index
    %c0_58 = arith.constant 0 : index
    %c0_59 = arith.constant 0 : index
    %55 = vector.load %arg5[%c0_57, %c0_58, %c0_59] : memref<7x16x16xf32, #tpu.memory_space<vmem>>, vector<1x16x16xf32>
    %56 = vector.shape_cast %55 : vector<1x16x16xf32> to vector<16x16xf32>
    %c0_60 = arith.constant 0 : index
    %c0_61 = arith.constant 0 : index
    %57 = vector.load %arg10[%c0_60, %c0_61] : memref<16x128xf32, #tpu.memory_space<vmem>>, vector<16x8xf32>
    %cst_62 = arith.constant dense<0.000000e+00> : vector<16x8xf32>
    %58 = tpu.matmul %56, %57, %cst_62 {dimension_numbers = #tpu.dot_dimension_numbers<[1], [0], [0], [1], [0, 0, 1, 1], [], []>} : vector<16x16xf32>, vector<16x8xf32>, vector<16x8xf32> -> vector<16x8xf32>
    %59 = arith.addf %54, %58 : vector<16x8xf32>
    %c1_63 = arith.constant 1 : index
    %c0_64 = arith.constant 0 : index
    %c0_65 = arith.constant 0 : index
    %60 = vector.load %arg5[%c1_63, %c0_64, %c0_65] : memref<7x16x16xf32, #tpu.memory_space<vmem>>, vector<1x16x16xf32>
    %61 = vector.shape_cast %60 : vector<1x16x16xf32> to vector<16x16xf32>
    %c0_66 = arith.constant 0 : index
    %c2_67 = arith.constant 2 : index
    %62 = vector.load %arg10[%c0_66, %c2_67] : memref<16x128xf32, #tpu.memory_space<vmem>>, vector<16x8xf32>
    %cst_68 = arith.constant dense<0.000000e+00> : vector<16x8xf32>
    %63 = tpu.matmul %61, %62, %cst_68 {dimension_numbers = #tpu.dot_dimension_numbers<[1], [0], [0], [1], [0, 0, 1, 1], [], []>} : vector<16x16xf32>, vector<16x8xf32>, vector<16x8xf32> -> vector<16x8xf32>
    %64 = arith.addf %59, %63 : vector<16x8xf32>
    %c2_69 = arith.constant 2 : index
    %c0_70 = arith.constant 0 : index
    %c0_71 = arith.constant 0 : index
    %65 = vector.load %arg5[%c2_69, %c0_70, %c0_71] : memref<7x16x16xf32, #tpu.memory_space<vmem>>, vector<1x16x16xf32>
    %66 = vector.shape_cast %65 : vector<1x16x16xf32> to vector<16x16xf32>
    %c0_72 = arith.constant 0 : index
    %c4_73 = arith.constant 4 : index
    %67 = vector.load %arg10[%c0_72, %c4_73] : memref<16x128xf32, #tpu.memory_space<vmem>>, vector<16x8xf32>
    %cst_74 = arith.constant dense<0.000000e+00> : vector<16x8xf32>
    %68 = tpu.matmul %66, %67, %cst_74 {dimension_numbers = #tpu.dot_dimension_numbers<[1], [0], [0], [1], [0, 0, 1, 1], [], []>} : vector<16x16xf32>, vector<16x8xf32>, vector<16x8xf32> -> vector<16x8xf32>
    %69 = arith.addf %64, %68 : vector<16x8xf32>
    %c3_75 = arith.constant 3 : index
    %c0_76 = arith.constant 0 : index
    %c0_77 = arith.constant 0 : index
    %70 = vector.load %arg5[%c3_75, %c0_76, %c0_77] : memref<7x16x16xf32, #tpu.memory_space<vmem>>, vector<1x16x16xf32>
    %71 = vector.shape_cast %70 : vector<1x16x16xf32> to vector<16x16xf32>
    %c0_78 = arith.constant 0 : index
    %c6_79 = arith.constant 6 : index
    %72 = vector.load %arg10[%c0_78, %c6_79] : memref<16x128xf32, #tpu.memory_space<vmem>>, vector<16x8xf32>
    %cst_80 = arith.constant dense<0.000000e+00> : vector<16x8xf32>
    %73 = tpu.matmul %71, %72, %cst_80 {dimension_numbers = #tpu.dot_dimension_numbers<[1], [0], [0], [1], [0, 0, 1, 1], [], []>} : vector<16x16xf32>, vector<16x8xf32>, vector<16x8xf32> -> vector<16x8xf32>
    %74 = arith.addf %69, %73 : vector<16x8xf32>
    %c4_81 = arith.constant 4 : index
    %c0_82 = arith.constant 0 : index
    %c0_83 = arith.constant 0 : index
    %75 = vector.load %arg5[%c4_81, %c0_82, %c0_83] : memref<7x16x16xf32, #tpu.memory_space<vmem>>, vector<1x16x16xf32>
    %76 = vector.shape_cast %75 : vector<1x16x16xf32> to vector<16x16xf32>
    %c0_84 = arith.constant 0 : index
    %c8_85 = arith.constant 8 : index
    %77 = vector.load %arg10[%c0_84, %c8_85] : memref<16x128xf32, #tpu.memory_space<vmem>>, vector<16x8xf32>
    %cst_86 = arith.constant dense<0.000000e+00> : vector<16x8xf32>
    %78 = tpu.matmul %76, %77, %cst_86 {dimension_numbers = #tpu.dot_dimension_numbers<[1], [0], [0], [1], [0, 0, 1, 1], [], []>} : vector<16x16xf32>, vector<16x8xf32>, vector<16x8xf32> -> vector<16x8xf32>
    %79 = arith.addf %74, %78 : vector<16x8xf32>
    %c5 = arith.constant 5 : index
    %c0_87 = arith.constant 0 : index
    %c0_88 = arith.constant 0 : index
    %80 = vector.load %arg5[%c5, %c0_87, %c0_88] : memref<7x16x16xf32, #tpu.memory_space<vmem>>, vector<1x16x16xf32>
    %81 = vector.shape_cast %80 : vector<1x16x16xf32> to vector<16x16xf32>
    %c0_89 = arith.constant 0 : index
    %c10_90 = arith.constant 10 : index
    %82 = vector.load %arg10[%c0_89, %c10_90] : memref<16x128xf32, #tpu.memory_space<vmem>>, vector<16x8xf32>
    %cst_91 = arith.constant dense<0.000000e+00> : vector<16x8xf32>
    %83 = tpu.matmul %81, %82, %cst_91 {dimension_numbers = #tpu.dot_dimension_numbers<[1], [0], [0], [1], [0, 0, 1, 1], [], []>} : vector<16x16xf32>, vector<16x8xf32>, vector<16x8xf32> -> vector<16x8xf32>
    %84 = arith.addf %79, %83 : vector<16x8xf32>
    %c6_92 = arith.constant 6 : index
    %c0_93 = arith.constant 0 : index
    %c0_94 = arith.constant 0 : index
    %85 = vector.load %arg5[%c6_92, %c0_93, %c0_94] : memref<7x16x16xf32, #tpu.memory_space<vmem>>, vector<1x16x16xf32>
    %86 = vector.shape_cast %85 : vector<1x16x16xf32> to vector<16x16xf32>
    %c0_95 = arith.constant 0 : index
    %c12 = arith.constant 12 : index
    %87 = vector.load %arg10[%c0_95, %c12] : memref<16x128xf32, #tpu.memory_space<vmem>>, vector<16x8xf32>
    %cst_96 = arith.constant dense<0.000000e+00> : vector<16x8xf32>
    %88 = tpu.matmul %86, %87, %cst_96 {dimension_numbers = #tpu.dot_dimension_numbers<[1], [0], [0], [1], [0, 0, 1, 1], [], []>} : vector<16x16xf32>, vector<16x8xf32>, vector<16x8xf32> -> vector<16x8xf32>
    %89 = arith.addf %84, %88 : vector<16x8xf32>
    %c0_97 = arith.constant 0 : index
    %c0_98 = arith.constant 0 : index
    %90 = vector.load %arg6[%c0_97, %c0_98] : memref<16x1xf32, #tpu.memory_space<vmem>>, vector<16x1xf32>
    %91 = vector.broadcast %90 : vector<16x1xf32> to vector<16x8xf32>
    %92 = arith.addf %89, %91 : vector<16x8xf32>
    %c1_99 = arith.constant 1 : index
    %93 = memref.load %arg7[%c1_99] : memref<2xf32, #tpu.memory_space<smem>>
    %cst_100 = arith.constant 0.000000e+00 : f32
    %94 = vector.broadcast %cst_100 : f32 to vector<16x8xf32>
    %95 = arith.cmpf ogt, %92, %94 : vector<16x8xf32>
    %96 = vector.broadcast %93 : f32 to vector<16x8xf32>
    %97 = arith.mulf %96, %92 : vector<16x8xf32>
    %98 = arith.select %95, %92, %97 : vector<16x8xi1>, vector<16x8xf32>
    %c0_101 = arith.constant 0 : index
    %c0_102 = arith.constant 0 : index
    %99 = vector.load %arg8[%c0_101, %c0_102] : memref<16x8xf32, #tpu.memory_space<vmem>>, vector<16x8xf32>
    tpu.vector_store %arg8[%c0_101, %c0_102], %98 {strides = array<i32>} : memref<16x8xf32, #tpu.memory_space<vmem>>, vector<16x8xf32>,
    %100 = arith.subf %2, %92 : vector<16x8xf32>
    %cst_103 = arith.constant 9.99999974E-5 : f32
    %101 = vector.broadcast %cst_103 : f32 to vector<16x8xf32>
    %102 = arith.cmpf ogt, %100, %101 : vector<16x8xf32>
    %cst_104 = arith.constant 0.000000e+00 : f32
    %103 = vector.broadcast %cst_104 : f32 to vector<16x8xf32>
    %104 = arith.select %102, %100, %103 : vector<16x8xi1>, vector<16x8xf32>
    %c0_105 = arith.constant 0 : index
    %c0_106 = arith.constant 0 : index
    %105 = vector.load %arg9[%c0_105, %c0_106] : memref<16x8xf32, #tpu.memory_space<vmem>>, vector<16x8xf32>
    tpu.vector_store %arg9[%c0_105, %c0_106], %104 {strides = array<i32>} : memref<16x8xf32, #tpu.memory_space<vmem>>, vector<16x8xf32>,
    return
  }
}

module attributes {stable_mosaic.version = 11 : i64} {
  func.func @_fc_kernel(%arg0: memref<8x16xf32, #tpu.memory_space<vmem>>, %arg1: memref<16x32xf32, #tpu.memory_space<vmem>>, %arg2: memref<1x32xf32, #tpu.memory_space<vmem>>, %arg3: memref<2xf32, #tpu.memory_space<smem>>, %arg4: memref<8x32xf32, #tpu.memory_space<vmem>>) attributes {dimension_semantics = [], scalar_prefetch = 0 : i64, scratch_operands = 0 : i64, tpu.core_type = #tpu.core_type<tc>} {
    %c0 = arith.constant 0 : index
    %c0_0 = arith.constant 0 : index
    %0 = vector.load %arg0[%c0, %c0_0] : memref<8x16xf32, #tpu.memory_space<vmem>>, vector<8x16xf32>
    %c0_1 = arith.constant 0 : index
    %c0_2 = arith.constant 0 : index
    %1 = vector.load %arg1[%c0_1, %c0_2] : memref<16x32xf32, #tpu.memory_space<vmem>>, vector<16x32xf32>
    %cst = arith.constant dense<0.000000e+00> : vector<8x32xf32>
    %2 = tpu.matmul %0, %1, %cst {dimension_numbers = #tpu.dot_dimension_numbers<[1], [0], [0], [1], [0, 0, 1, 1], [], []>} : vector<8x16xf32>, vector<16x32xf32>, vector<8x32xf32> -> vector<8x32xf32>
    %c0_3 = arith.constant 0 : index
    %c0_4 = arith.constant 0 : index
    %3 = vector.load %arg2[%c0_3, %c0_4] : memref<1x32xf32, #tpu.memory_space<vmem>>, vector<1x32xf32>
    %4 = vector.broadcast %3 : vector<1x32xf32> to vector<8x32xf32>
    %5 = arith.addf %2, %4 : vector<8x32xf32>
    %c0_5 = arith.constant 0 : index
    %6 = memref.load %arg3[%c0_5] : memref<2xf32, #tpu.memory_space<smem>>
    %c1 = arith.constant 1 : index
    %7 = memref.load %arg3[%c1] : memref<2xf32, #tpu.memory_space<smem>>
    %cst_6 = arith.constant 0.000000e+00 : f32
    %8 = vector.broadcast %cst_6 : f32 to vector<8x32xf32>
    %9 = arith.cmpf ogt, %5, %8 : vector<8x32xf32>
    %10 = vector.broadcast %6 : f32 to vector<8x32xf32>
    %11 = arith.mulf %10, %5 : vector<8x32xf32>
    %12 = arith.select %9, %5, %11 : vector<8x32xi1>, vector<8x32xf32>
    %cst_7 = arith.constant 0.000000e+00 : f32
    %13 = vector.broadcast %cst_7 : f32 to vector<8x32xf32>
    %14 = arith.cmpf ogt, %12, %13 : vector<8x32xf32>
    %15 = vector.broadcast %7 : f32 to vector<8x32xf32>
    %16 = arith.mulf %15, %12 : vector<8x32xf32>
    %17 = arith.select %14, %12, %16 : vector<8x32xi1>, vector<8x32xf32>
    %c0_8 = arith.constant 0 : index
    %c0_9 = arith.constant 0 : index
    %18 = vector.load %arg4[%c0_8, %c0_9] : memref<8x32xf32, #tpu.memory_space<vmem>>, vector<8x32xf32>
    tpu.vector_store %arg4[%c0_8, %c0_9], %17 {strides = array<i32>} : memref<8x32xf32, #tpu.memory_space<vmem>>, vector<8x32xf32>,
    return
  }
}

</mosaic_0001>

<bundles_post_ra>
// kernel: concat_v2_forward.3
= control target key start
LH: loop header
LB: loop body
LE: loop exit
PB: predicated region body
PF: predicated region fallthrough
CT: control target
= control target key end

     0   :  { %9 = vsyncpa [#allocation4], 0  ;;  %s258_s0 = inlined_call_operand.vmem [shape: f32[8,16], index: 0, kind: input, shape index: {}]   ;;  %s259_s1 = inlined_call_operand.vmem [shape: f32[16,32], index: 1, kind: input, shape index: {}]   ;;  %s260_s2 = inlined_call_operand.vmem [shape: f32[1,32], index: 2, kind: input, shape index: {}]   ;;  %s261_s3 = inlined_call_operand.vmem [shape: f32[2], index: 3, kind: input, shape index: {}]   ;;  %s262_s4 = inlined_call_operand.hbm [shape: f32[8,32], index: 4, kind: output, shape index: {}]  }
   0x1   :  { %10 = vsyncpa [#allocation3], 0  ;;  %s23_s17 = sshll.u32 %s261_s3, 4  ;;  %s24_s17 = int_to_ptr.vmem [resolvable:$true] %s23_s17 }
   0x2   :  { %s163_s18 = scalar_lea.vmem %s24_s17, 16  ;;  %p168_p1 = scmp.lt.s32.totalorder %s24_s17, %s24_s17 }
   0x3   :  { %p164_p0 = scmp.ne.s32.totalorder %s24_s17, %s163_s18  ;;  %p169_p2 = scmp.lt.s32.totalorder %s163_s18, %s163_s18 }
   0x5   :  { %p170_p3 = por %p169_p2, %p168_p1 }
   0x7   :  { %p171_p4 = pnand %p170_p3, %p164_p0 }
   0x9   :  { %174 = shalt.err (!%p171_p4)
}
   0xa   :  { %s201_s19 = smov [#allocation2]  }
   0xb   :  { %26 = dma.vmem_to_smem %s24_s17, 16, %s201_s19, [#allocation4]  }
   0xc   :  { %197 = dma.done.wait [#allocation4], 16  }
   0xd   :  { %198 = vsyncadd [#allocation4], 4294967280 }
   0xe   :  { %30 = sfence }
   0xf   :  { %v32_v0 = vld [vmem:[%s259_s1] sm:$0xff]  ;;  %v33_v1 = vld [vmem:[%s259_s1 + $0x8] sm:$0xff]  ;;  %v202_v2 = vmov 0.0|0.0   ;;  %vm203_vm0 = vmmov 0   ;;  %v204_v4 = vmov 0.0   ;;  %vm41_vm1 = vcmask 130048  }
  0x10   :  { %155 = vmatprep.subr.bf16.mxu0 %v202_v2  ;;  %v156_v3 = vpack.c.bf16 %v33_v1, %v32_v0  ;;  %152 = vmatprep.mubr.msk.f32.mxu0 %vm203_vm0, %v204_v4  ;;  %v31_v5 = vld [vmem:[%s258_s0] sm:$0xff]  ;;  %s115_s25 = sld [smem:[#allocation2]]  ;;  %s144_s26 = sld [smem:[#allocation2 + $0x1]]  ;;  %vm125_vm4 = vcmask 261120  }
  0x11   :  { %v142_v6 = vld [vmem:[%s260_s2] ss:$0 sm:$0xff]  ;;  %s205_s1 = smov [#allocation5]  }
  0x12   :  { %157 = vmatpush3.bf16.msra.mxu0 %v156_v3  ;;  %s133_s29 = sshll.u32 %s205_s1, 4  ;;  %s134_s29 = int_to_ptr.vmem [resolvable:$true] %s133_s29 }
  0x13   :  { %s175_s0 = scalar_lea.vmem %s134_s29, 128  ;;  %p180_p6 = scmp.lt.s32.totalorder %s134_s29, %s134_s29 }
  0x14   :  { %p176_p5 = scmp.ne.s32.totalorder %s134_s29, %s175_s0  ;;  %p181_p7 = scmp.lt.s32.totalorder %s175_s0, %s175_s0 }
  0x15   :  { %153 = vmatmul.mubr.msk.f32.vlgmr.msra.gmra.mrb[0].mxu0 %vm41_vm1, %v31_v5 }
  0x16   :  { %v118_v8 = vstv %s115_s25  ;;  %v122_v12 = vstv %s144_s26  ;;  %p182_p8 = por %p181_p7, %p180_p6 }
  0x18   :  { %p183_p9 = pnand %p182_p8, %p176_p5 }
  0xe8   :  { %v111_v7 = vpop.f32.mrb[0].mxu0 }
  0xe9   :  { %v112_v9 = vadd.f32 %v142_v6, %v111_v7  ;;  %v154_v10 = vpop.f32.mrb[1].mxu0 }
  0xeb   :  { %vm117_vm2 = vcmp.gt.f32.partialorder %v112_v9, 0.0  ;;  %v119_v11 = vmul.f32 %v118_v8, %v112_v9 }
  0xed   :  { %v120_v13 = vsel %vm117_vm2, %v112_v9, %v119_v11 }
  0xee   :  { %vm121_vm3 = vcmp.gt.f32.partialorder %v120_v13, 0.0  ;;  %v123_v14 = vmul.f32 %v122_v12, %v120_v13 }
  0xf0   :  { %v124_v15 = vsel %vm121_vm3, %v120_v13, %v123_v14 }
  0xf1   :  { %126 = vst.msk [vmem:[#allocation5] sm:$0xff] %vm125_vm4, %v124_v15 }
  0xf2   :  { %186 = shalt.err (!%p183_p9)
}
  0xf3   :  { %s187_s5 = scalar_lea.hbm %s262_s4, 128 }
  0xf4   :  { %p188_p10 = scmp.ne.s32.totalorder %s262_s4, %s187_s5  ;;  %p191_p11 = scmp.lt.u32.totalorder %s187_s5, %s262_s4 }
  0xf6   :  { %p193_p12 = pnand %p191_p11, %p188_p10 }
  0xf8   :  { %196 = shalt.err (!%p193_p12)
}
  0xf9   :  { %136 = dma.vmem_to_hbm [thread:$0]  %s134_s29, 128, %s262_s4, [#allocation3]  }
  0xfa   :  { %199 = dma.done.wait [#allocation3], 128  }
  0xfb   :  { %200 = vsyncadd [#allocation3], 4294967168 }
  0xfc   :  { %140 = vsyncpa [#allocation3], 1 }
  0xfd   :  { %141 = vsyncpa [#allocation4], 1 }

// kernel: concat_v2_forward.2
= control target key start
LH: loop header
LB: loop body
LE: loop exit
PB: predicated region body
PF: predicated region fallthrough
CT: control target
= control target key end

     0   :  { %15 = vsyncpa [#allocation4], 0  ;;  %s2207_s0 = inlined_call_operand.vmem [shape: f32[16,8], index: 0, kind: input, shape index: {}]   ;;  %s2208_s1 = inlined_call_operand.hbm [shape: f32[3,16,16], index: 1, kind: input, shape index: {}]   ;;  %s2209_s2 = inlined_call_operand.vmem [shape: f32[16,1], index: 2, kind: input, shape index: {}]   ;;  %s2210_s3 = inlined_call_operand.vmem [shape: f32[5,16,16], index: 3, kind: input, shape index: {}]   ;;  %s2211_s4 = inlined_call_operand.vmem [shape: f32[16,1], index: 4, kind: input, shape index: {}]   ;;  %s2212_s5 = inlined_call_operand.hbm [shape: f32[7,16,16], index: 5, kind: input, shape index: {}]   ;;  %s2213_s6 = inlined_call_operand.vmem [shape: f32[16,1], index: 6, kind: input, shape index: {}]   ;;  %s2214_s7 = inlined_call_operand.vmem [shape: f32[2], index: 7, kind: input, shape index: {}]   ;;  %s2215_s8 = inlined_call_operand.vmem [shape: f32[16,8], index: 8, kind: output, shape index: {0}]   ;;  %s2216_s9 = inlined_call_operand.vmem [shape: f32[16,8], index: 9, kind: output, shape index: {1}]  }
   0x1   :  { %16 = vsyncpa [#allocation7], 0 }
   0x2   :  { %17 = vsyncpa [#allocation5], 0  ;;  %s1987_s30 = smov [#allocation3]   ;;  %s1925_s13 = scalar_lea.hbm %s2208_s1, 768 }
   0x3   :  { %s25_s10 = sshll.u32 %s1987_s30, 4  ;;  %p1926_p0 = scmp.ne.s32.totalorder %s2208_s1, %s1925_s13  ;;  %s26_s10 = int_to_ptr.vmem [resolvable:$true] %s25_s10 }
   0x4   :  { %p1929_p1 = scmp.lt.u32.totalorder %s1925_s13, %s2208_s1 }
   0x6   :  { %p1931_p2 = pnand %p1929_p1, %p1926_p0 }
   0x8   :  { %1934 = shalt.err (!%p1931_p2)
}
   0x9   :  { %s1935_s18 = scalar_lea.vmem %s26_s10, 768  ;;  %p1940_p4 = scmp.lt.s32.totalorder %s26_s10, %s26_s10 }
   0xa   :  { %p1936_p3 = scmp.ne.s32.totalorder %s26_s10, %s1935_s18  ;;  %p1941_p5 = scmp.lt.s32.totalorder %s1935_s18, %s1935_s18 }
   0xc   :  { %p1942_p6 = por %p1941_p5, %p1940_p4 }
   0xe   :  { %p1943_p7 = pnand %p1942_p6, %p1936_p3 }
  0x10   :  { %1946 = shalt.err (!%p1943_p7)
}
  0x11   :  { %s1988_s19 = smov 128   ;;  %s1989_s20 = smov 8  }
  0x12   :  { %31 = dma.hbm_to_vmem [thread:$0]  %s2208_s1, 768, %s26_s10, [#allocation4], %s1988_s19, %s1988_s19, %s1989_s20  }
  0x13   :  { %s1990_s23 = smov [#allocation6]   ;;  %s58_s27 = sshll.u32 %s2214_s7, 4  ;;  %s59_s27 = int_to_ptr.vmem [resolvable:$true] %s58_s27 }
  0x14   :  { %s43_s24 = sshll.u32 %s1990_s23, 4  ;;  %s1947_s30 = scalar_lea.hbm %s2212_s5, 1792  ;;  %s44_s24 = int_to_ptr.vmem [resolvable:$true] %s43_s24 }
  0x15   :  { %p1948_p8 = scmp.ne.s32.totalorder %s2212_s5, %s1947_s30  ;;  %p1951_p9 = scmp.lt.u32.totalorder %s1947_s30, %s2212_s5 }
  0x17   :  { %p1953_p10 = pnand %p1951_p9, %p1948_p8 }
  0x19   :  { %1956 = shalt.err (!%p1953_p10)
}
  0x1a   :  { %s1957_s1 = scalar_lea.vmem %s44_s24, 1792  ;;  %p1962_p12 = scmp.lt.s32.totalorder %s44_s24, %s44_s24 }
  0x1b   :  { %p1958_p11 = scmp.ne.s32.totalorder %s44_s24, %s1957_s1  ;;  %p1963_p13 = scmp.lt.s32.totalorder %s1957_s1, %s1957_s1 }
  0x1d   :  { %p1964_p0 = por %p1963_p13, %p1962_p12 }
  0x1f   :  { %p1965_p1 = pnand %p1964_p0, %p1958_p11 }
  0x21   :  { %1968 = shalt.err (!%p1965_p1)
}
  0x22   :  { %49 = dma.hbm_to_vmem [thread:$0]  %s2212_s5, 1792, %s44_s24, [#allocation7], %s1988_s19, %s1988_s19, %s1989_s20  }
  0x23   :  { %s1969_s15 = scalar_lea.vmem %s59_s27, 16  ;;  %p1974_p3 = scmp.lt.s32.totalorder %s59_s27, %s59_s27 }
  0x24   :  { %p1970_p2 = scmp.ne.s32.totalorder %s59_s27, %s1969_s15  ;;  %p1975_p4 = scmp.lt.s32.totalorder %s1969_s15, %s1969_s15 }
  0x26   :  { %p1976_p5 = por %p1975_p4, %p1974_p3 }
  0x28   :  { %p1977_p6 = pnand %p1976_p5, %p1970_p2 }
  0x2a   :  { %1980 = shalt.err (!%p1977_p6)
}
  0x2b   :  { %s1991_s16 = smov [#allocation8]  }
  0x2c   :  { %61 = dma.vmem_to_smem %s59_s27, 16, %s1991_s16, [#allocation5]  }
  0x2d   :  { %1981 = dma.done.wait [#allocation4], 768  }
  0x2e   :  { %1982 = vsyncadd [#allocation4], 4294966528 }
  0x2f   :  { %1983 = dma.done.wait [#allocation7], 1792  }
  0x30   :  { %1984 = vsyncadd [#allocation7], 4294965504 }
  0x31   :  { %1985 = dma.done.wait [#allocation5], 16  }
  0x32   :  { %1986 = vsyncadd [#allocation5], 4294967280 }
  0x33   :  { %71 = sfence }
  0x34   :  { %v2081_v0 = vld [vmem:[%s2207_s0] sm:$0xff]  ;;  %s1992_s5 = smov 6   ;;  %v1993_v1 = vmov 0.0   ;;  %v2088_v2 = vld [vmem:[%s2207_s0 + $0x8] sm:$0xff]  ;;  %vm84_vm0 = vcmask 113712   ;;  %v92_v5 = vld [vmem:[#allocation3 + $0x10] sm:$0xff] }
  0x35   :  { %78 = vrot.lane.b32.xlu0 %v2081_v0, %s1992_s5  ;;  %72 = vst [vmem:[#allocation2] sm:$0xff] %v1993_v1  ;;  %73 = vst [vmem:[#allocation2 + $0x8] sm:$0xff] %v1993_v1  ;;  %vm102_vm1 = vcmask 130048   ;;  %v272_v6 = vld [vmem:[#allocation3 + $0x20] sm:$0xff]  ;;  %s1994_s0 = smov 120   ;;  %s1995_s21 = smov 122  }
  0x36   :  { %1654 = vmatprep.mubr.msk.f32.mxu1 %vm102_vm1, %v92_v5  ;;  %1668 = vmatprep.mubr.msk.f32.mxu0 %vm102_vm1, %v272_v6  ;;  %v364_v10 = vld [vmem:[%s2209_s2 + $0x8] sm:$0xff]  ;;  %s1996_s24 = smov 124   ;;  %v1997_v11 = vmov 0   ;;  %v363_v12 = vld [vmem:[%s2209_s2] sm:$0xff]  ;;  %v93_v24 = vld [vmem:[#allocation3 + $0x18] sm:$0xff]  ;;  %s1998_s28 = smov 126  }
  0x37   :  { %1869 = vset.pattern.permute.xlu0 %v1997_v11  ;;  %1868 = vset.pattern.permute.xlu1 %v1997_v11  ;;  %v87_v26 = vld [vmem:[#allocation3] sm:$0xff]  ;;  %v273_v27 = vld [vmem:[#allocation3 + $0x28] sm:$0xff]  ;;  %v1557_v41 = vld [vmem:[%s2210_s3 + $0x10] sm:$0xff]  ;;  %s1999_s11 = smov 118   ;;  %vm1529_vm3 = vcmask 64512  }
  0x38   :  { %v88_v28 = vld [vmem:[#allocation3 + $0x8] sm:$0xff]  ;;  %v846_v45 = vld [vmem:[%s2211_s4] sm:$0xff]  ;;  %v1558_v58 = vld [vmem:[%s2210_s3 + $0x18] sm:$0xff] }
  0x39   :  { %80 = vrot.lane.b32.xlu0 %v2088_v2, %s1992_s5  ;;  %v847_v46 = vld [vmem:[%s2211_s4 + $0x8] sm:$0xff]  ;;  %v387_v59 = vld [vmem:[%s2210_s3] sm:$0xff]  ;;  %v1568_v11 = vld [vmem:[%s2210_s3 + $0x38] sm:$0xff] }
  0x3a   :  { %v388_v1 = vld [vmem:[%s2210_s3 + $0x8] sm:$0xff] }
  0xa7   :  { %v79_v3 = vpop.permute.xlu0 %78 }
  0xa8   :  { %85 = vst.msk [vmem:[#allocation2] sm:$0xff] %vm84_vm0, %v79_v3  ;;  %v1563_v3 = vld [vmem:[%s2210_s3 + $0x20] sm:$0xff] }
  0xab   :  { %v81_v4 = vpop.permute.xlu0 %80 }
  0xac   :  { %86 = vst.msk [vmem:[#allocation2 + $0x8] sm:$0xff] %vm84_vm0, %v81_v4 }
  0xaf   :  { %v89_v7 = vld [vmem:[#allocation2] sm:$0xff] }
  0xb3   :  { %v90_v8 = vld [vmem:[#allocation2 + $0x8] sm:$0xff] }
  0xb4   :  { %v1863_v9 = vpack.i.bf16 %v90_v8, %v89_v7  ;;  %v1564_v8 = vld [vmem:[%s2210_s3 + $0x28] sm:$0xff] }
  0xb6   :  { %1864 = vrot.lane.b32.xlu0 %v1863_v9, %s1994_s0  ;;  %1854 = vrot.lane.b32.xlu1 %v1863_v9, %s1995_s21 }
  0xba   :  { %1859 = vrot.lane.b32.xlu1 %v1863_v9, %s1996_s24  ;;  %372 = vperm.xlu0 %1869, %v364_v10   ;;  %v1567_v9 = vld [vmem:[%s2210_s3 + $0x30] sm:$0xff] }
  0xbe   :  { %367 = vperm.xlu1 %1868, %v363_v12   ;;  %v1571_v12 = vld [vmem:[%s2210_s3 + $0x40] sm:$0xff] }
 0x128   :  { %v1865_v13 = vpop.permute.xlu0 %1864  ;;  %v1855_v14 = vpop.permute.xlu1 %1854 }
 0x129   :  { %v1867_v15 = vunpack.i.h.bf16 %v1865_v13  ;;  %v1866_v16 = vunpack.i.l.bf16 %v1865_v13  ;;  %v1857_v17 = vunpack.i.h.bf16 %v1855_v14  ;;  %v1856_v18 = vunpack.i.l.bf16 %v1855_v14  ;;  %v1572_v13 = vld [vmem:[%s2210_s3 + $0x48] sm:$0xff]  ;;  %s2000_s3 = smov 116  }
 0x12b   :  { %v1755_v19 = vpack.c.bf16 %v1857_v17, %v1856_v18  ;;  %v1763_v20 = vpack.c.bf16 %v1867_v15, %v1866_v16 }
 0x12c   :  { %v1860_v21 = vpop.permute.xlu1 %1859 }
 0x12d   :  { %v1862_v22 = vunpack.i.h.bf16 %v1860_v21  ;;  %v1861_v23 = vunpack.i.l.bf16 %v1860_v21  ;;  %1756 = vmatprep.subr.bf16.mxu1 %v1755_v19  ;;  %1764 = vmatprep.subr.bf16.mxu0 %v1763_v20 }
 0x12e   :  { %1758 = vmatpush3.bf16.msra.mxu1 %v1755_v19  ;;  %1766 = vmatpush3.bf16.msra.mxu0 %v1763_v20 }
 0x12f   :  { %v1759_v25 = vpack.c.bf16 %v1862_v22, %v1861_v23  ;;  %v875_v22 = vld [vmem:[#allocation6 + $0x10] sm:$0xff] }
 0x131   :  { %1655 = vmatmul.mubr.msk.f32.vlgmr.msra.gmra.mrb[0].mxu1 %vm102_vm1, %v93_v24  ;;  %1760 = vmatprep.subr.bf16.mxu1 %v1759_v25 }
 0x132   :  { %1762 = vmatpush3.bf16.msra.mxu1 %v1759_v25  ;;  %1661 = vmatprep.mubr.msk.f32.mxu1 %vm102_vm1, %v87_v26 }
 0x133   :  { %1669 = vmatmul.mubr.msk.f32.vlgmr.msra.gmra.mrb[0].mxu0 %vm102_vm1, %v273_v27  ;;  %v1508_v27 = vld [vmem:[%s2213_s6 + $0x8] sm:$0xff] }
 0x134   :  { %1710 = vmatprep.mubr.msk.f32.mxu0 %vm102_vm1, %v875_v22 }
 0x139   :  { %1662 = vmatmul.mubr.msk.f32.vlgmr.msra.gmra.mrb[0].mxu1 %vm102_vm1, %v88_v28  ;;  %v373_v37 = vpop.permute.xlu0 %372  ;;  %v1507_v28 = vld [vmem:[%s2213_s6] sm:$0xff]  ;;  %s1589_s6 = sld [smem:[#allocation8 + $0x1]] }
 0x13a   :  { %1675 = vmatprep.mubr.msk.f32.mxu1 %vm102_vm1, %v1557_v41 }
 0x13d   :  { %v368_v34 = vpop.permute.xlu1 %367 }
 0x206   :  { %v1670_v29 = vpop.f32.mrb[0].mxu0 }
 0x207   :  { %v352_v30 = vpop.f32.mrb[1].mxu0 }
 0x20c   :  { %v1663_v31 = vpop.f32.mrb[0].mxu1 }
 0x20d   :  { %v1815_v32 = vadd.f32 %v1670_v29, %v1663_v31  ;;  %v262_v33 = vpop.f32.mrb[1].mxu1 }
 0x20e   :  { %v1816_v35 = vadd.f32 %v352_v30, %v262_v33 }
 0x20f   :  { %v376_v38 = vadd.f32 %v1815_v32, %v373_v37  ;;  %v870_v37 = vld [vmem:[#allocation6] sm:$0xff] }
 0x210   :  { %v375_v36 = vadd.f32 %v1816_v35, %v368_v34 }
 0x212   :  { %379 = vrot.lane.b32.xlu1 %v375_v36, %s1992_s5  ;;  %v876_v36 = vld [vmem:[#allocation6 + $0x18] sm:$0xff] }
 0x216   :  { %381 = vrot.lane.b32.xlu1 %v376_v38, %s1992_s5 }
 0x284   :  { %v380_v39 = vpop.permute.xlu1 %379 }
 0x285   :  { %385 = vst.msk [vmem:[#allocation2] sm:$0xff] %vm84_vm0, %v380_v39 }
 0x288   :  { %v382_v40 = vpop.permute.xlu1 %381 }
 0x289   :  { %386 = vst.msk [vmem:[#allocation2 + $0x8] sm:$0xff] %vm84_vm0, %v382_v40 }
 0x28c   :  { %v389_v42 = vld [vmem:[#allocation2] sm:$0xff] }
 0x290   :  { %v390_v43 = vld [vmem:[#allocation2 + $0x8] sm:$0xff] }
 0x291   :  { %v1875_v44 = vpack.i.bf16 %v390_v43, %v389_v42  ;;  %v871_v42 = vld [vmem:[#allocation6 + $0x8] sm:$0xff]  ;;  %v1048_v43 = vld [vmem:[#allocation6 + $0x20] sm:$0xff] }
 0x293   :  { %1876 = vrot.lane.b32.xlu1 %v1875_v44, %s1998_s28  ;;  %1871 = vrot.lane.b32.xlu0 %v1875_v44, %s1996_s24 }
 0x297   :  { %1886 = vrot.lane.b32.xlu1 %v1875_v44, %s1994_s0  ;;  %1881 = vrot.lane.b32.xlu0 %v1875_v44, %s1995_s21 }
 0x29b   :  { %850 = vperm.xlu1 %1868, %v846_v45   ;;  %1891 = vrot.lane.b32.xlu0 %v1875_v44, %s1999_s11 }
 0x29f   :  { %855 = vperm.xlu0 %1869, %v847_v46  }
 0x305   :  { %v1877_v47 = vpop.permute.xlu1 %1876  ;;  %v1872_v48 = vpop.permute.xlu0 %1871 }
 0x306   :  { %v1879_v49 = vunpack.i.h.bf16 %v1877_v47  ;;  %v1878_v50 = vunpack.i.l.bf16 %v1877_v47  ;;  %v1874_v51 = vunpack.i.h.bf16 %v1872_v48  ;;  %v1873_v52 = vunpack.i.l.bf16 %v1872_v48  ;;  %v1049_v48 = vld [vmem:[#allocation6 + $0x28] sm:$0xff] }
 0x308   :  { %v1767_v53 = vpack.c.bf16 %v1874_v51, %v1873_v52  ;;  %v1771_v55 = vpack.c.bf16 %v1879_v49, %v1878_v50  ;;  %v1140_v49 = vld [vmem:[#allocation6 + $0x30] sm:$0xff] }
 0x309   :  { %v1882_v54 = vpop.permute.xlu0 %1881  ;;  %v1887_v61 = vpop.permute.xlu1 %1886 }
 0x30a   :  { %v1884_v56 = vunpack.i.h.bf16 %v1882_v54  ;;  %v1883_v57 = vunpack.i.l.bf16 %v1882_v54  ;;  %1768 = vmatprep.subr.bf16.mxu1 %v1767_v53  ;;  %v1889_v62 = vunpack.i.h.bf16 %v1887_v61  ;;  %v1888_v63 = vunpack.i.l.bf16 %v1887_v61  ;;  %v1141_v54 = vld [vmem:[#allocation6 + $0x38] sm:$0xff]  ;;  %v1324_v61 = vld [vmem:[#allocation6 + $0x50] sm:$0xff] }
 0x30b   :  { %1770 = vmatpush3.bf16.msra.mxu1 %v1767_v53 }
 0x30c   :  { %1772 = vmatprep.subr.bf16.mxu1 %v1771_v55  ;;  %v1775_v60 = vpack.c.bf16 %v1884_v56, %v1883_v57  ;;  %v1779_v4 = vpack.c.bf16 %v1889_v62, %v1888_v63  ;;  %v1325_v63 = vld [vmem:[#allocation6 + $0x58] sm:$0xff] }
 0x30d   :  { %v1892_v5 = vpop.permute.xlu0 %1891 }
 0x30e   :  { %1676 = vmatmul.mubr.msk.f32.vlgmr.msra.gmra.mrb[2].mxu1 %vm102_vm1, %v1558_v58  ;;  %v1894_v6 = vunpack.i.h.bf16 %v1892_v5  ;;  %v1893_v7 = vunpack.i.l.bf16 %v1892_v5 }
 0x30f   :  { %1774 = vmatpush3.bf16.msra.mxu1 %v1771_v55  ;;  %1682 = vmatprep.mubr.msk.f32.mxu1 %vm102_vm1, %v387_v59  ;;  %v1232_v55 = vld [vmem:[#allocation6 + $0x40] sm:$0xff] }
 0x310   :  { %1776 = vmatprep.subr.bf16.mxu1 %v1775_v60  ;;  %v1783_v10 = vpack.c.bf16 %v1894_v6, %v1893_v7  ;;  %v1524_v6 = vstv %s1589_s6 }
 0x316   :  { %1683 = vmatmul.mubr.msk.f32.vlgmr.msra.gmra.mrb[2].mxu1 %vm102_vm1, %v388_v1  ;;  %v1416_v1 = vld [vmem:[#allocation6 + $0x60] sm:$0xff] }
 0x317   :  { %1778 = vmatpush3.bf16.msra.mxu1 %v1775_v60  ;;  %1689 = vmatprep.mubr.msk.f32.mxu1 %vm102_vm1, %v1563_v3  ;;  %v1233_v60 = vld [vmem:[#allocation6 + $0x48] sm:$0xff] }
 0x318   :  { %1780 = vmatprep.subr.bf16.mxu1 %v1779_v4  ;;  %v1417_v3 = vld [vmem:[#allocation6 + $0x68] sm:$0xff] }
 0x31a   :  { %v851_v16 = vpop.permute.xlu1 %850 }
 0x31e   :  { %1690 = vmatmul.mubr.msk.f32.vlgmr.msra.gmra.mrb[2].mxu1 %vm102_vm1, %v1564_v8  ;;  %v856_v14 = vpop.permute.xlu0 %855 }
 0x31f   :  { %1782 = vmatpush3.bf16.msra.mxu1 %v1779_v4  ;;  %1696 = vmatprep.mubr.msk.f32.mxu1 %vm102_vm1, %v1567_v9 }
 0x320   :  { %1784 = vmatprep.subr.bf16.mxu1 %v1783_v10 }
 0x326   :  { %1697 = vmatmul.mubr.msk.f32.vlgmr.msra.gmra.mrb[2].mxu1 %vm102_vm1, %v1568_v11 }
 0x327   :  { %1786 = vmatpush3.bf16.msra.mxu1 %v1783_v10  ;;  %1703 = vmatprep.mubr.msk.f32.mxu1 %vm102_vm1, %v1571_v12 }
 0x32e   :  { %1704 = vmatmul.mubr.msk.f32.vlgmr.msra.gmra.mrb[2].mxu1 %vm102_vm1, %v1572_v13 }
 0x401   :  { %v1705_v15 = vpop.f32.mrb[2].mxu1 }
 0x402   :  { %v859_v17 = vadd.f32 %v1705_v15, %v856_v14  ;;  %v835_v18 = vpop.f32.mrb[3].mxu1 }
 0x403   :  { %v858_v19 = vadd.f32 %v851_v16, %v835_v18 }
 0x404   :  { %864 = vrot.lane.b32.xlu0 %v859_v17, %s1992_s5 }
 0x405   :  { %862 = vrot.lane.b32.xlu1 %v858_v19, %s1992_s5 }
 0x476   :  { %v865_v20 = vpop.permute.xlu0 %864 }
 0x477   :  { %869 = vst.msk [vmem:[#allocation2 + $0x8] sm:$0xff] %vm84_vm0, %v865_v20  ;;  %v863_v21 = vpop.permute.xlu1 %862 }
 0x478   :  { %868 = vst.msk [vmem:[#allocation2] sm:$0xff] %vm84_vm0, %v863_v21 }
 0x47e   :  { %v873_v23 = vld [vmem:[#allocation2 + $0x8] sm:$0xff] }
 0x47f   :  { %v872_v24 = vld [vmem:[#allocation2] sm:$0xff] }
 0x480   :  { %v1900_v25 = vpack.i.bf16 %v873_v23, %v872_v24  ;;  %v1791_v26 = vpack.c.bf16 %v873_v23, %v872_v24 }
 0x482   :  { %1901 = vrot.lane.b32.xlu0 %v1900_v25, %s1996_s24  ;;  %1896 = vrot.lane.b32.xlu1 %v1900_v25, %s1998_s28 }
 0x486   :  { %1911 = vrot.lane.b32.xlu0 %v1900_v25, %s1994_s0  ;;  %1906 = vrot.lane.b32.xlu1 %v1900_v25, %s1995_s21 }
 0x48a   :  { %1921 = vrot.lane.b32.xlu0 %v1900_v25, %s2000_s3  ;;  %1916 = vrot.lane.b32.xlu1 %v1900_v25, %s1999_s11 }
 0x48e   :  { %1516 = vperm.xlu0 %1869, %v1508_v27   ;;  %1511 = vperm.xlu1 %1868, %v1507_v28  }
 0x4f4   :  { %v1897_v29 = vpop.permute.xlu1 %1896  ;;  %v1902_v32 = vpop.permute.xlu0 %1901 }
 0x4f5   :  { %v1899_v30 = vunpack.i.h.bf16 %v1897_v29  ;;  %v1898_v31 = vunpack.i.l.bf16 %v1897_v29  ;;  %v1904_v34 = vunpack.i.h.bf16 %v1902_v32  ;;  %v1903_v35 = vunpack.i.l.bf16 %v1902_v32 }
 0x4f7   :  { %v1787_v33 = vpack.c.bf16 %v1899_v30, %v1898_v31  ;;  %v1795_v38 = vpack.c.bf16 %v1904_v34, %v1903_v35 }
 0x4f8   :  { %v1907_v39 = vpop.permute.xlu1 %1906  ;;  %v1912_v45 = vpop.permute.xlu0 %1911 }
 0x4f9   :  { %1788 = vmatprep.subr.bf16.mxu0 %v1787_v33  ;;  %v1909_v40 = vunpack.i.h.bf16 %v1907_v39  ;;  %v1908_v41 = vunpack.i.l.bf16 %v1907_v39  ;;  %v1914_v46 = vunpack.i.h.bf16 %v1912_v45  ;;  %v1913_v47 = vunpack.i.l.bf16 %v1912_v45 }
 0x4fa   :  { %1790 = vmatpush3.bf16.msra.mxu0 %v1787_v33 }
 0x4fb   :  { %1792 = vmatprep.subr.bf16.mxu0 %v1791_v26  ;;  %v1799_v44 = vpack.c.bf16 %v1909_v40, %v1908_v41  ;;  %v1803_v50 = vpack.c.bf16 %v1914_v46, %v1913_v47 }
 0x4fc   :  { %v1917_v51 = vpop.permute.xlu1 %1916  ;;  %v1922_v57 = vpop.permute.xlu0 %1921 }
 0x4fd   :  { %1711 = vmatmul.mubr.msk.f32.vlgmr.msra.gmra.mrb[2].mxu0 %vm102_vm1, %v876_v36  ;;  %v1919_v52 = vunpack.i.h.bf16 %v1917_v51  ;;  %v1918_v53 = vunpack.i.l.bf16 %v1917_v51  ;;  %v1924_v58 = vunpack.i.h.bf16 %v1922_v57  ;;  %v1923_v59 = vunpack.i.l.bf16 %v1922_v57 }
 0x4fe   :  { %1794 = vmatpush3.bf16.msra.mxu0 %v1791_v26  ;;  %1717 = vmatprep.mubr.msk.f32.mxu0 %vm102_vm1, %v870_v37 }
 0x4ff   :  { %1796 = vmatprep.subr.bf16.mxu0 %v1795_v38  ;;  %v1807_v56 = vpack.c.bf16 %v1919_v52, %v1918_v53  ;;  %v1811_v62 = vpack.c.bf16 %v1924_v58, %v1923_v59 }
 0x505   :  { %1718 = vmatmul.mubr.msk.f32.vlgmr.msra.gmra.mrb[2].mxu0 %vm102_vm1, %v871_v42 }
 0x506   :  { %1798 = vmatpush3.bf16.msra.mxu0 %v1795_v38  ;;  %1724 = vmatprep.mubr.msk.f32.mxu0 %vm102_vm1, %v1048_v43 }
 0x507   :  { %1800 = vmatprep.subr.bf16.mxu0 %v1799_v44 }
 0x50d   :  { %1725 = vmatmul.mubr.msk.f32.vlgmr.msra.gmra.mrb[2].mxu0 %vm102_vm1, %v1049_v48  ;;  %v1517_v4 = vpop.permute.xlu0 %1516  ;;  %v1512_v7 = vpop.permute.xlu1 %1511 }
 0x50e   :  { %1802 = vmatpush3.bf16.msra.mxu0 %v1799_v44  ;;  %1731 = vmatprep.mubr.msk.f32.mxu0 %vm102_vm1, %v1140_v49 }
 0x50f   :  { %1804 = vmatprep.subr.bf16.mxu0 %v1803_v50 }
 0x515   :  { %1732 = vmatmul.mubr.msk.f32.vlgmr.msra.gmra.mrb[2].mxu0 %vm102_vm1, %v1141_v54 }
 0x516   :  { %1806 = vmatpush3.bf16.msra.mxu0 %v1803_v50  ;;  %1738 = vmatprep.mubr.msk.f32.mxu0 %vm102_vm1, %v1232_v55 }
 0x517   :  { %1808 = vmatprep.subr.bf16.mxu0 %v1807_v56 }
 0x51d   :  { %1739 = vmatmul.mubr.msk.f32.vlgmr.msra.gmra.mrb[2].mxu0 %vm102_vm1, %v1233_v60 }
 0x51e   :  { %1810 = vmatpush3.bf16.msra.mxu0 %v1807_v56  ;;  %1745 = vmatprep.mubr.msk.f32.mxu0 %vm102_vm1, %v1324_v61 }
 0x51f   :  { %1812 = vmatprep.subr.bf16.mxu0 %v1811_v62 }
 0x525   :  { %1746 = vmatmul.mubr.msk.f32.vlgmr.msra.gmra.mrb[2].mxu0 %vm102_vm1, %v1325_v63 }
 0x526   :  { %1814 = vmatpush3.bf16.msra.mxu0 %v1811_v62  ;;  %1752 = vmatprep.mubr.msk.f32.mxu0 %vm102_vm1, %v1416_v1 }
 0x52d   :  { %1753 = vmatmul.mubr.msk.f32.vlgmr.msra.gmra.mrb[2].mxu0 %vm102_vm1, %v1417_v3 }
 0x600   :  { %v1754_v5 = vpop.f32.mrb[2].mxu0 }
 0x601   :  { %v1520_v8 = vadd.f32 %v1754_v5, %v1517_v4  ;;  %v1496_v9 = vpop.f32.mrb[3].mxu0 }
 0x602   :  { %v1519_v10 = vadd.f32 %v1512_v7, %v1496_v9 }
 0x603   :  { %vm1523_vm2 = vcmp.gt.f32.partialorder %v1520_v8, 0.0  ;;  %v1526_v11 = vmul.f32 %v1524_v6, %v1520_v8  ;;  %v1533_v12 = vsub.f32 %v2088_v2, %v1520_v8 }
 0x604   :  { %vm1522_vm4 = vcmp.gt.f32.partialorder %v1519_v10, 0.0  ;;  %v1525_v13 = vmul.f32 %v1524_v6, %v1519_v10  ;;  %v1532_v14 = vsub.f32 %v2081_v0, %v1519_v10 }
 0x605   :  { %v1528_v15 = vsel %vm1523_vm2, %v1520_v8, %v1526_v11  ;;  %vm1535_vm5 = vcmp.gt.f32.partialorder %v1533_v12, 0.0001 }
 0x606   :  { %1531 = vst.msk [vmem:[%s2215_s8 + $0x8] sm:$0xff] %vm1529_vm3, %v1528_v15  ;;  %v1537_v16 = vsel %vm1535_vm5, %v1533_v12, 0.0  ;;  %v1527_v17 = vsel %vm1522_vm4, %v1519_v10, %v1525_v13  ;;  %vm1534_vm6 = vcmp.gt.f32.partialorder %v1532_v14, 0.0001 }
 0x607   :  { %1539 = vst.msk [vmem:[%s2216_s9 + $0x8] sm:$0xff] %vm1529_vm3, %v1537_v16  ;;  %1530 = vst.msk [vmem:[%s2215_s8] sm:$0xff] %vm1529_vm3, %v1527_v17  ;;  %v1536_v2 = vsel %vm1534_vm6, %v1532_v14, 0.0 }
 0x608   :  { %1538 = vst.msk [vmem:[%s2216_s9] sm:$0xff] %vm1529_vm3, %v1536_v2 }
 0x609   :  { %1548 = vsyncpa [#allocation4], 1 }
 0x60a   :  { %1549 = vsyncpa [#allocation7], 1 }
 0x60b   :  { %1550 = vsyncpa [#allocation5], 1 }

</bundles_post_ra>
